<compile_context>
chip_gen: v7x
topology: tpu7x:2x2x1
jax: 0.10.0
libtpu: 0.0.40
codegen_flags: <defaults>
</compile_context>

<pallas_src>
import functools

import jax
import jax.numpy as jnp
from jax.experimental import pallas as pl
from jax.experimental.pallas import tpu as pltpu

KSIZE = 7
PAD = KSIZE // 2        # 3
PE = 4                  # head/tail lane pad of the packed-pool scratch (>= PAD)
BN_EPS = 1e-5


def _round_up(n, m):
    return ((n + m - 1) // m) * m


def _cdiv(a, b):
    return -(-a // b)


def _fused_kernel(x_ref, w_ref, bias_ref, masks_ref, wpack_ref, out_ref, p_ref,
                  *, W2, ext):
    """One (batch, lane-tile) grid step.

    x_ref     : (2C, T + 2*ext) bf16  rfft2 [real | imag] channels, tile + conv halo lanes
    w_ref     : (2C, 2C)        bf16  1x1-conv weight with BN scale folded in
    bias_ref  : (2C, 1)         f32   folded eval-mode BN bias
    masks_ref : (24, T)         f32   rows 0..15: per-(dy,ch) row validity (0/1),
                                      rows 16..22: per-dx col validity, row 23: pad
    wpack_ref : (16, 8)         f32   7x7 conv weights packed as [2*dy + ch, dx]
    out_ref   : (2C, T)         f32   X_F_hat tile (interior lanes only)
    p_ref     : (16, T + 2*PE)  f32   scratch: dy-shifted (avg, max) pool copies
    """
    T = out_ref.shape[-1]
    Lp = T + 2 * PE

    # ---- 1x1 conv (+ folded BN scale) on the MXU; bias + ReLU on the VPU ----
    y = jnp.dot(w_ref[...], x_ref[...], preferred_element_type=jnp.float32)
    y = jnp.maximum(y + bias_ref[...], 0.0)                    # (2C, T + 2*ext)

    # ---- channel mean / max pooling (sublane reduction) ----
    avg = jnp.mean(y, axis=0, keepdims=True)
    mx = jnp.max(y, axis=0, keepdims=True)
    pool = jnp.concatenate([avg, mx], axis=0)                  # (2, T + 2*ext)

    # ---- pack the 7 dy-shifted (avg, max) row pairs into 16 sublanes ----
    # p_ref[2*dy + ch, q] = pool[ch, ext + (dy - 3)*W2 - PE + q]
    for dy in range(KSIZE):
        base = ext + (dy - PAD) * W2 - PE
        p_ref[2 * dy:2 * dy + 2, :] = pool[:, base:base + Lp]
    p_ref[2 * KSIZE:16, :] = jnp.zeros((2, Lp), jnp.float32)   # keep unused sublanes finite

    # ---- 7x7 spatial conv: only 7 dx taps on full (16, T) vregs ----
    # Zero-padding validity (and the lane-pad / halo garbage) is handled by the
    # precomputed 0/1 masks: col masks fold into the tap FMA, row masks apply once.
    rm = masks_ref[0:16, :]                                    # (16, T)
    acc = jnp.zeros((16, T), jnp.float32)
    for dx in range(KSIZE):
        win = p_ref[:, PE + dx - PAD:PE + dx - PAD + T]        # (16, T)
        colm = masks_ref[16 + dx:17 + dx, :]                   # (1, T)
        acc = acc + wpack_ref[:, dx:dx + 1] * (win * colm)
    conv = jnp.sum(acc * rm, axis=0, keepdims=True)            # (1, T)

    mask = jax.nn.sigmoid(conv)                                # EUP
    out_ref[...] = (y[:, ext:ext + T] * mask).astype(out_ref.dtype)


def ada_fre_fusion(x, w1x1, gamma, beta, run_mean, run_var, w7, *, tile_lanes=None):
    B, C, H, W = x.shape
    C2 = 2 * C

    # ---- rfft2 (plain JAX; no Pallas FFT) ----
    t = jnp.fft.rfft2(x.astype(jnp.float32), axes=(-2, -1))    # (B, C, H, W2) complex64
    W2 = t.shape[-1]
    HW = H * W2

    # ---- lane tiling (tile size is a multiple of 128; halo is lane-aligned) ----
    hw128 = _round_up(HW, 128)
    max_t = _round_up(tile_lanes, 128) if tile_lanes else 2048
    num_tiles = _cdiv(hw128, max_t)
    T = _round_up(_cdiv(hw128, num_tiles), 128)
    HWp = num_tiles * T
    ext = _round_up(PAD * W2 + PAD + PE, 128)                  # conv halo per side
    Tx = T + 2 * ext

    # real | imag channel-blocked spectra; zero lane padding never reaches valid outputs
    # (out-of-image taps are killed by the 0/1 masks) -- keep this invariant if retiling.
    xr = jnp.real(t).reshape(B, C, HW)
    xi = jnp.imag(t).reshape(B, C, HW)
    xcat = jnp.concatenate([xr, xi], axis=1)                   # (B, 2C, HW)
    xpad = jnp.pad(xcat, ((0, 0), (0, 0), (ext, HWp - HW + ext))).astype(jnp.bfloat16)
    # overlapping (tile + halo) windows, materialized so each grid step gets a
    # rectangular, auto-pipelined DMA (halo is recomputed in-kernel per tile)
    xhalo = jnp.stack([xpad[:, :, j * T:j * T + Tx] for j in range(num_tiles)], axis=1)

    # block channel order [re_0..re_{C-1}, im_0..im_{C-1}]: permute the tiny weight/BN
    # params instead of shuffling the big activation; fold BN scale into W in f32.
    perm = jnp.concatenate([jnp.arange(0, C2, 2), jnp.arange(1, C2, 2)])
    scale = gamma / jnp.sqrt(run_var + BN_EPS)
    bias = beta - scale * run_mean
    w_scaled = ((w1x1 * scale[:, None])[perm][:, perm]).astype(jnp.bfloat16)   # (2C, 2C)
    bias_blk = bias[perm].reshape(C2, 1).astype(jnp.float32)

    # precomputed 0/1 validity masks (replace per-tap compares / where / rowcol input)
    lin = jnp.arange(HWp, dtype=jnp.int32)
    in_img = lin < HW
    row = lin // W2
    col = lin % W2
    zero = jnp.zeros((HWp,), jnp.float32)
    rows = []
    for dy in range(KSIZE):
        r = (in_img & (row + dy - PAD >= 0) & (row + dy - PAD < H)).astype(jnp.float32)
        rows += [r, r]                                         # duplicated per (avg, max)
    rows += [zero, zero]
    for dx in range(KSIZE):
        c = (in_img & (col + dx - PAD >= 0) & (col + dx - PAD < W2)).astype(jnp.float32)
        rows.append(c)
    rows.append(zero)
    masks = jnp.stack(rows, axis=0)                            # (24, HWp)

    # 7x7 weights packed to match the 16-sublane pool layout: wpack[2*dy+ch, dx]
    wpack = jnp.pad(jnp.transpose(w7[0], (1, 0, 2)).reshape(2 * KSIZE, KSIZE),
                    ((0, 2), (0, 1))).astype(jnp.float32)      # (16, 8)

    kernel = functools.partial(_fused_kernel, W2=W2, ext=ext)
    cost = pl.CostEstimate(
        flops=2 * B * C2 * C2 * HWp + 8 * B * C2 * HWp + 64 * B * HWp,
        transcendentals=B * HWp,
        bytes_accessed=(xhalo.size * 2 + w_scaled.size * 2 + bias_blk.size * 4
                        + masks.size * 4 + wpack.size * 4 + B * C2 * HWp * 4),
    )
    out = pl.pallas_call(
        kernel,
        grid=(B, num_tiles),
        in_specs=[
            pl.BlockSpec((None, None, C2, Tx), lambda b, j: (b, j, 0, 0)),   # spectra tile
            pl.BlockSpec((C2, C2), lambda b, j: (0, 0)),                     # folded weight
            pl.BlockSpec((C2, 1), lambda b, j: (0, 0)),                      # folded bias
            pl.BlockSpec((24, T), lambda b, j: (0, j)),                      # validity masks
            pl.BlockSpec((16, 8), lambda b, j: (0, 0)),                      # packed 7x7 w
        ],
        out_specs=pl.BlockSpec((None, C2, T), lambda b, j: (b, 0, j)),
        out_shape=jax.ShapeDtypeStruct((B, C2, HWp), jnp.float32),
        scratch_shapes=[pltpu.VMEM((16, T + 2 * PE), jnp.float32)],
        compiler_params=pltpu.CompilerParams(
            dimension_semantics=("parallel", "parallel"),
            vmem_limit_bytes=48 * 1024 * 1024,
        ),
        cost_estimate=cost,
    )(xhalo, w_scaled, bias_blk, masks, wpack)

    # ---- inverse rFFT (plain JAX) ----
    re = out[:, :C, :HW].reshape(B, C, H, W2)
    im = out[:, C:, :HW].reshape(B, C, H, W2)
    return jnp.fft.irfft2(jax.lax.complex(re, im), s=(H, W), axes=(-2, -1))


def reference(x, w1x1, gamma, beta, run_mean, run_var, w7, quantize=False):
    """Pure-JAX reference mirroring the PyTorch forward (eval-mode BN).

    quantize=True mimics the kernel's bf16 cast of the spectra and the scale-folded
    1x1 weight, isolating algorithmic/indexing errors from bf16 rounding.
    """
    B, C, H, W = x.shape
    t = jnp.fft.rfft2(x.astype(jnp.float32), axes=(-2, -1))
    W2 = t.shape[-1]
    ffted = jnp.transpose(jnp.stack([jnp.real(t), jnp.imag(t)], -1), (0, 1, 4, 2, 3))
    XF = ffted.reshape(B, 2 * C, H, W2)
    scale = gamma / jnp.sqrt(run_var + BN_EPS)
    bias = beta - scale * run_mean
    w_eff = w1x1 * scale[:, None]
    if quantize:
        XF = XF.astype(jnp.bfloat16).astype(jnp.float32)
        w_eff = w_eff.astype(jnp.bfloat16).astype(jnp.float32)
    XF = jnp.einsum("oc,bchw->bohw", w_eff, XF) + bias[None, :, None, None]
    XF = jnp.maximum(XF, 0.0)
    avg = jnp.mean(XF, axis=1, keepdims=True)
    mx = jnp.max(XF, axis=1, keepdims=True)
    pool = jnp.concatenate([avg, mx], axis=1)
    conv = jax.lax.conv_general_dilated(
        pool, w7, window_strides=(1, 1), padding=((PAD, PAD), (PAD, PAD)),
        dimension_numbers=("NCHW", "OIHW", "NCHW"))
    mask = jax.nn.sigmoid(conv)
    XFh = XF * mask
    XFh = jnp.transpose(XFh.reshape(B, C, 2, H, W2), (0, 1, 3, 4, 2))
    comp = jax.lax.complex(XFh[..., 0], XFh[..., 1])
    return jnp.fft.irfft2(comp, s=(H, W), axes=(-2, -1))


if __name__ == "__main__":
    B, C, H, W = 2, 4, 16, 16
    C2 = 2 * C
    key = jax.random.PRNGKey(0)
    kx, kw1, kw7 = jax.random.split(key, 3)

    x = jax.random.normal(kx, (B, C, H, W), dtype=jnp.float32)
    # deterministic synthetic parameters (shapes from the module's __init__)
    w1x1 = 0.1 * jax.random.normal(kw1, (C2, C2), dtype=jnp.float32)             # Conv2d(2C,2C,1)
    w7 = 0.05 * jax.random.normal(kw7, (1, 2, KSIZE, KSIZE), dtype=jnp.float32)  # Conv2d(2,1,7)
    gamma = 1.0 + 0.1 * jnp.arange(C2, dtype=jnp.float32)                        # BN weight
    beta = 0.05 * jnp.arange(C2, dtype=jnp.float32)                              # BN bias
    run_mean = 0.02 * jnp.arange(C2, dtype=jnp.float32)                          # BN running_mean
    run_var = 1.0 + 0.05 * jnp.arange(C2, dtype=jnp.float32)                     # BN running_var

    # tile_lanes=128 forces 2 lane tiles so the halo / multi-tile path is exercised
    out = ada_fre_fusion(x, w1x1, gamma, beta, run_mean, run_var, w7, tile_lanes=128)
    out = jax.block_until_ready(out)
    assert out.shape == (B, C, H, W)

    ref_q = reference(x, w1x1, gamma, beta, run_mean, run_var, w7, quantize=True)
    ref_f = reference(x, w1x1, gamma, beta, run_mean, run_var, w7, quantize=False)
    err_q = float(jnp.max(jnp.abs(out - ref_q)))
    err_f = float(jnp.max(jnp.abs(out - ref_f)))
    # tight check vs a bf16-matched reference (catches indexing / mask / tiling bugs)
    assert jnp.allclose(out, ref_q, rtol=1e-3, atol=1e-3), err_q
    # loose check vs the exact f32 reference (absorbs bf16 MXU-feed rounding)
    assert jnp.allclose(out, ref_f, rtol=3e-2, atol=3e-2), err_f

    # default (single-tile) path
    out1 = ada_fre_fusion(x, w1x1, gamma, beta, run_mean, run_var, w7)
    out1 = jax.block_until_ready(out1)
    assert jnp.allclose(out1, ref_q, rtol=1e-3, atol=1e-3), \
        float(jnp.max(jnp.abs(out1 - ref_q)))

    print("KERNEL_OK")
</pallas_src>

<mosaic_0001>
module attributes {stable_mosaic.version = 11 : i64} {
  func.func @_fused_kernel(%arg0: i32, %arg1: i32, %arg2: memref<1x1x8x384xbf16, #tpu.memory_space<vmem>>, %arg3: memref<8x8xbf16, #tpu.memory_space<vmem>>, %arg4: memref<8x1xf32, #tpu.memory_space<vmem>>, %arg5: memref<24x128xf32, #tpu.memory_space<vmem>>, %arg6: memref<16x8xf32, #tpu.memory_space<vmem>>, %arg7: memref<1x8x128xf32, #tpu.memory_space<vmem>>, %arg8: memref<16x136xf32, #tpu.memory_space<vmem>>) attributes {dimension_semantics = [#tpu.dimension_semantics<parallel>, #tpu.dimension_semantics<parallel>], iteration_bounds = array<i64: 2, 2>, scalar_prefetch = 0 : i64, scratch_operands = 1 : i64, tpu.core_type = #tpu.core_type<tc>, window_params = [{transform_indices = @transform_0, window_bounds = array<i64: 1, 1, 8, 384>}, {pipeline_mode = #tpu.pipeline_mode<synchronous>, transform_indices = @transform_1, window_bounds = array<i64: 8, 8>}, {pipeline_mode = #tpu.pipeline_mode<synchronous>, transform_indices = @transform_2, window_bounds = array<i64: 8, 1>}, {transform_indices = @transform_3, window_bounds = array<i64: 24, 128>}, {pipeline_mode = #tpu.pipeline_mode<synchronous>, transform_indices = @transform_4, window_bounds = array<i64: 16, 8>}, {transform_indices = @transform_5, window_bounds = array<i64: 1, 8, 128>}]} {
    %c0 = arith.constant 0 : index
    %c0_0 = arith.constant 0 : index
    %0 = vector.load %arg3[%c0, %c0_0] : memref<8x8xbf16, #tpu.memory_space<vmem>>, vector<8x8xbf16>
    %c0_1 = arith.constant 0 : index
    %c0_2 = arith.constant 0 : index
    %c0_3 = arith.constant 0 : index
    %c0_4 = arith.constant 0 : index
    %1 = vector.load %arg2[%c0_1, %c0_2, %c0_3, %c0_4] : memref<1x1x8x384xbf16, #tpu.memory_space<vmem>>, vector<1x1x8x384xbf16>
    %2 = vector.shape_cast %1 : vector<1x1x8x384xbf16> to vector<8x384xbf16>
    %cst = arith.constant dense<0.000000e+00> : vector<8x384xf32>
    %3 = tpu.matmul %0, %2, %cst {dimension_numbers = #tpu.dot_dimension_numbers<[1], [0], [0], [1], [0, 0, 1, 1], [], []>} : vector<8x8xbf16>, vector<8x384xbf16>, vector<8x384xf32> -> vector<8x384xf32>
    %c0_5 = arith.constant 0 : index
    %c0_6 = arith.constant 0 : index
    %4 = vector.load %arg4[%c0_5, %c0_6] : memref<8x1xf32, #tpu.memory_space<vmem>>, vector<8x1xf32>
    %5 = vector.broadcast %4 : vector<8x1xf32> to vector<8x384xf32>
    %6 = arith.addf %3, %5 : vector<8x384xf32>
    %cst_7 = arith.constant 0.000000e+00 : f32
    %7 = vector.broadcast %cst_7 : f32 to vector<8x384xf32>
    %8 = arith.maximumf %6, %7 : vector<8x384xf32>
    %cst_8 = arith.constant dense<0.000000e+00> : vector<384xf32>
    %9 = vector.multi_reduction <add>, %8, %cst_8 [0] : vector<8x384xf32> to vector<384xf32>
    %10 = vector.shape_cast %9 : vector<384xf32> to vector<1x384xf32>
    %cst_9 = arith.constant 8.000000e+00 : f32
    %11 = vector.broadcast %cst_9 : f32 to vector<1x384xf32>
    %12 = arith.divf %10, %11 : vector<1x384xf32>
    %cst_10 = arith.constant dense<0xFF800000> : vector<384xf32>
    %13 = vector.multi_reduction <maximumf>, %8, %cst_10 [0] : vector<8x384xf32> to vector<384xf32>
    %14 = vector.shape_cast %13 : vector<384xf32> to vector<1x384xf32>
    %15 = tpu.concatenate %12, %14 in 0 : vector<1x384xf32>, vector<1x384xf32> -> vector<2x384xf32>
    %16 = vector.extract_strided_slice %15 {offsets = [0, 97], sizes = [2, 136], strides = [1, 1]} : vector<2x384xf32> to vector<2x136xf32>
    %c0_11 = arith.constant 0 : index
    %c0_12 = arith.constant 0 : index
    %17 = vector.load %arg8[%c0_11, %c0_12] : memref<16x136xf32, #tpu.memory_space<vmem>>, vector<2x136xf32>
    tpu.vector_store %arg8[%c0_11, %c0_12], %16 {strides = array<i32>} : memref<16x136xf32, #tpu.memory_space<vmem>>, vector<2x136xf32>,
    %18 = vector.extract_strided_slice %15 {offsets = [0, 106], sizes = [2, 136], strides = [1, 1]} : vector<2x384xf32> to vector<2x136xf32>
    %c2 = arith.constant 2 : index
    %c0_13 = arith.constant 0 : index
    %19 = vector.load %arg8[%c2, %c0_13] : memref<16x136xf32, #tpu.memory_space<vmem>>, vector<2x136xf32>
    tpu.vector_store %arg8[%c2, %c0_13], %18 {strides = array<i32>} : memref<16x136xf32, #tpu.memory_space<vmem>>, vector<2x136xf32>,
    %20 = vector.extract_strided_slice %15 {offsets = [0, 115], sizes = [2, 136], strides = [1, 1]} : vector<2x384xf32> to vector<2x136xf32>
    %c4 = arith.constant 4 : index
    %c0_14 = arith.constant 0 : index
    %21 = vector.load %arg8[%c4, %c0_14] : memref<16x136xf32, #tpu.memory_space<vmem>>, vector<2x136xf32>
    tpu.vector_store %arg8[%c4, %c0_14], %20 {strides = array<i32>} : memref<16x136xf32, #tpu.memory_space<vmem>>, vector<2x136xf32>,
    %22 = vector.extract_strided_slice %15 {offsets = [0, 124], sizes = [2, 136], strides = [1, 1]} : vector<2x384xf32> to vector<2x136xf32>
    %c6 = arith.constant 6 : index
    %c0_15 = arith.constant 0 : index
    %23 = vector.load %arg8[%c6, %c0_15] : memref<16x136xf32, #tpu.memory_space<vmem>>, vector<2x136xf32>
    tpu.vector_store %arg8[%c6, %c0_15], %22 {strides = array<i32>} : memref<16x136xf32, #tpu.memory_space<vmem>>, vector<2x136xf32>,
    %24 = vector.extract_strided_slice %15 {offsets = [0, 133], sizes = [2, 136], strides = [1, 1]} : vector<2x384xf32> to vector<2x136xf32>
    %c8 = arith.constant 8 : index
    %c0_16 = arith.constant 0 : index
    %25 = vector.load %arg8[%c8, %c0_16] : memref<16x136xf32, #tpu.memory_space<vmem>>, vector<2x136xf32>
    tpu.vector_store %arg8[%c8, %c0_16], %24 {strides = array<i32>} : memref<16x136xf32, #tpu.memory_space<vmem>>, vector<2x136xf32>,
    %26 = vector.extract_strided_slice %15 {offsets = [0, 142], sizes = [2, 136], strides = [1, 1]} : vector<2x384xf32> to vector<2x136xf32>
    %c10 = arith.constant 10 : index
    %c0_17 = arith.constant 0 : index
    %27 = vector.load %arg8[%c10, %c0_17] : memref<16x136xf32, #tpu.memory_space<vmem>>, vector<2x136xf32>
    tpu.vector_store %arg8[%c10, %c0_17], %26 {strides = array<i32>} : memref<16x136xf32, #tpu.memory_space<vmem>>, vector<2x136xf32>,
    %28 = vector.extract_strided_slice %15 {offsets = [0, 151], sizes = [2, 136], strides = [1, 1]} : vector<2x384xf32> to vector<2x136xf32>
    %c12 = arith.constant 12 : index
    %c0_18 = arith.constant 0 : index
    %29 = vector.load %arg8[%c12, %c0_18] : memref<16x136xf32, #tpu.memory_space<vmem>>, vector<2x136xf32>
    tpu.vector_store %arg8[%c12, %c0_18], %28 {strides = array<i32>} : memref<16x136xf32, #tpu.memory_space<vmem>>, vector<2x136xf32>,
    %cst_19 = arith.constant 0.000000e+00 : f32
    %30 = vector.broadcast %cst_19 : f32 to vector<2x136xf32>
    %c14 = arith.constant 14 : index
    %c0_20 = arith.constant 0 : index
    %31 = vector.load %arg8[%c14, %c0_20] : memref<16x136xf32, #tpu.memory_space<vmem>>, vector<2x136xf32>
    tpu.vector_store %arg8[%c14, %c0_20], %30 {strides = array<i32>} : memref<16x136xf32, #tpu.memory_space<vmem>>, vector<2x136xf32>,
    %c0_21 = arith.constant 0 : index
    %c0_22 = arith.constant 0 : index
    %32 = vector.load %arg5[%c0_21, %c0_22] : memref<24x128xf32, #tpu.memory_space<vmem>>, vector<16x128xf32>
    %cst_23 = arith.constant 0.000000e+00 : f32
    %33 = vector.broadcast %cst_23 : f32 to vector<16x128xf32>
    %c0_24 = arith.constant 0 : index
    %c1 = arith.constant 1 : index
    %34 = vector.load %arg8[%c0_24, %c1] : memref<16x136xf32, #tpu.memory_space<vmem>>, vector<16x128xf32>
    %c16 = arith.constant 16 : index
    %c0_25 = arith.constant 0 : index
    %35 = vector.load %arg5[%c16, %c0_25] : memref<24x128xf32, #tpu.memory_space<vmem>>, vector<1x128xf32>
    %c0_26 = arith.constant 0 : index
    %c0_27 = arith.constant 0 : index
    %36 = vector.load %arg6[%c0_26, %c0_27] : memref<16x8xf32, #tpu.memory_space<vmem>>, vector<16x1xf32>
    %37 = vector.broadcast %35 : vector<1x128xf32> to vector<16x128xf32>
    %38 = arith.mulf %34, %37 : vector<16x128xf32>
    %39 = vector.broadcast %36 : vector<16x1xf32> to vector<16x128xf32>
    %40 = arith.mulf %39, %38 : vector<16x128xf32>
    %41 = arith.addf %33, %40 : vector<16x128xf32>
    %c0_28 = arith.constant 0 : index
    %c2_29 = arith.constant 2 : index
    %42 = vector.load %arg8[%c0_28, %c2_29] : memref<16x136xf32, #tpu.memory_space<vmem>>, vector<16x128xf32>
    %c17 = arith.constant 17 : index
    %c0_30 = arith.constant 0 : index
    %43 = vector.load %arg5[%c17, %c0_30] : memref<24x128xf32, #tpu.memory_space<vmem>>, vector<1x128xf32>
    %c0_31 = arith.constant 0 : index
    %c1_32 = arith.constant 1 : index
    %44 = vector.load %arg6[%c0_31, %c1_32] : memref<16x8xf32, #tpu.memory_space<vmem>>, vector<16x1xf32>
    %45 = vector.broadcast %43 : vector<1x128xf32> to vector<16x128xf32>
    %46 = arith.mulf %42, %45 : vector<16x128xf32>
    %47 = vector.broadcast %44 : vector<16x1xf32> to vector<16x128xf32>
    %48 = arith.mulf %47, %46 : vector<16x128xf32>
    %49 = arith.addf %41, %48 : vector<16x128xf32>
    %c0_33 = arith.constant 0 : index
    %c3 = arith.constant 3 : index
    %50 = vector.load %arg8[%c0_33, %c3] : memref<16x136xf32, #tpu.memory_space<vmem>>, vector<16x128xf32>
    %c18 = arith.constant 18 : index
    %c0_34 = arith.constant 0 : index
    %51 = vector.load %arg5[%c18, %c0_34] : memref<24x128xf32, #tpu.memory_space<vmem>>, vector<1x128xf32>
    %c0_35 = arith.constant 0 : index
    %c2_36 = arith.constant 2 : index
    %52 = vector.load %arg6[%c0_35, %c2_36] : memref<16x8xf32, #tpu.memory_space<vmem>>, vector<16x1xf32>
    %53 = vector.broadcast %51 : vector<1x128xf32> to vector<16x128xf32>
    %54 = arith.mulf %50, %53 : vector<16x128xf32>
    %55 = vector.broadcast %52 : vector<16x1xf32> to vector<16x128xf32>
    %56 = arith.mulf %55, %54 : vector<16x128xf32>
    %57 = arith.addf %49, %56 : vector<16x128xf32>
    %c0_37 = arith.constant 0 : index
    %c4_38 = arith.constant 4 : index
    %58 = vector.load %arg8[%c0_37, %c4_38] : memref<16x136xf32, #tpu.memory_space<vmem>>, vector<16x128xf32>
    %c19 = arith.constant 19 : index
    %c0_39 = arith.constant 0 : index
    %59 = vector.load %arg5[%c19, %c0_39] : memref<24x128xf32, #tpu.memory_space<vmem>>, vector<1x128xf32>
    %c0_40 = arith.constant 0 : index
    %c3_41 = arith.constant 3 : index
    %60 = vector.load %arg6[%c0_40, %c3_41] : memref<16x8xf32, #tpu.memory_space<vmem>>, vector<16x1xf32>
    %61 = vector.broadcast %59 : vector<1x128xf32> to vector<16x128xf32>
    %62 = arith.mulf %58, %61 : vector<16x128xf32>
    %63 = vector.broadcast %60 : vector<16x1xf32> to vector<16x128xf32>
    %64 = arith.mulf %63, %62 : vector<16x128xf32>
    %65 = arith.addf %57, %64 : vector<16x128xf32>
    %c0_42 = arith.constant 0 : index
    %c5 = arith.constant 5 : index
    %66 = vector.load %arg8[%c0_42, %c5] : memref<16x136xf32, #tpu.memory_space<vmem>>, vector<16x128xf32>
    %c20 = arith.constant 20 : index
    %c0_43 = arith.constant 0 : index
    %67 = vector.load %arg5[%c20, %c0_43] : memref<24x128xf32, #tpu.memory_space<vmem>>, vector<1x128xf32>
    %c0_44 = arith.constant 0 : index
    %c4_45 = arith.constant 4 : index
    %68 = vector.load %arg6[%c0_44, %c4_45] : memref<16x8xf32, #tpu.memory_space<vmem>>, vector<16x1xf32>
    %69 = vector.broadcast %67 : vector<1x128xf32> to vector<16x128xf32>
    %70 = arith.mulf %66, %69 : vector<16x128xf32>
    %71 = vector.broadcast %68 : vector<16x1xf32> to vector<16x128xf32>
    %72 = arith.mulf %71, %70 : vector<16x128xf32>
    %73 = arith.addf %65, %72 : vector<16x128xf32>
    %c0_46 = arith.constant 0 : index
    %c6_47 = arith.constant 6 : index
    %74 = vector.load %arg8[%c0_46, %c6_47] : memref<16x136xf32, #tpu.memory_space<vmem>>, vector<16x128xf32>
    %c21 = arith.constant 21 : index
    %c0_48 = arith.constant 0 : index
    %75 = vector.load %arg5[%c21, %c0_48] : memref<24x128xf32, #tpu.memory_space<vmem>>, vector<1x128xf32>
    %c0_49 = arith.constant 0 : index
    %c5_50 = arith.constant 5 : index
    %76 = vector.load %arg6[%c0_49, %c5_50] : memref<16x8xf32, #tpu.memory_space<vmem>>, vector<16x1xf32>
    %77 = vector.broadcast %75 : vector<1x128xf32> to vector<16x128xf32>
    %78 = arith.mulf %74, %77 : vector<16x128xf32>
    %79 = vector.broadcast %76 : vector<16x1xf32> to vector<16x128xf32>
    %80 = arith.mulf %79, %78 : vector<16x128xf32>
    %81 = arith.addf %73, %80 : vector<16x128xf32>
    %c0_51 = arith.constant 0 : index
    %c7 = arith.constant 7 : index
    %82 = vector.load %arg8[%c0_51, %c7] : memref<16x136xf32, #tpu.memory_space<vmem>>, vector<16x128xf32>
    %c22 = arith.constant 22 : index
    %c0_52 = arith.constant 0 : index
    %83 = vector.load %arg5[%c22, %c0_52] : memref<24x128xf32, #tpu.memory_space<vmem>>, vector<1x128xf32>
    %c0_53 = arith.constant 0 : index
    %c6_54 = arith.constant 6 : index
    %84 = vector.load %arg6[%c0_53, %c6_54] : memref<16x8xf32, #tpu.memory_space<vmem>>, vector<16x1xf32>
    %85 = vector.broadcast %83 : vector<1x128xf32> to vector<16x128xf32>
    %86 = arith.mulf %82, %85 : vector<16x128xf32>
    %87 = vector.broadcast %84 : vector<16x1xf32> to vector<16x128xf32>
    %88 = arith.mulf %87, %86 : vector<16x128xf32>
    %89 = arith.addf %81, %88 : vector<16x128xf32>
    %90 = arith.mulf %89, %32 : vector<16x128xf32>
    %cst_55 = arith.constant dense<0.000000e+00> : vector<128xf32>
    %91 = vector.multi_reduction <add>, %90, %cst_55 [0] : vector<16x128xf32> to vector<128xf32>
    %92 = vector.shape_cast %91 : vector<128xf32> to vector<1x128xf32>
    %93 = arith.negf %92 : vector<1x128xf32>
    %94 = math.exp %93 : vector<1x128xf32>
    %cst_56 = arith.constant 1.000000e+00 : f32
    %95 = vector.broadcast %cst_56 : f32 to vector<1x128xf32>
    %96 = arith.addf %95, %94 : vector<1x128xf32>
    %97 = arith.divf %95, %96 : vector<1x128xf32>
    %98 = vector.extract_strided_slice %8 {offsets = [0, 128], sizes = [8, 128], strides = [1, 1]} : vector<8x384xf32> to vector<8x128xf32>
    %99 = vector.broadcast %97 : vector<1x128xf32> to vector<8x128xf32>
    %100 = arith.mulf %98, %99 : vector<8x128xf32>
    %c0_57 = arith.constant 0 : index
    %c0_58 = arith.constant 0 : index
    %c0_59 = arith.constant 0 : index
    %101 = vector.load %arg7[%c0_57, %c0_58, %c0_59] : memref<1x8x128xf32, #tpu.memory_space<vmem>>, vector<1x8x128xf32>
    %102 = vector.shape_cast %101 : vector<1x8x128xf32> to vector<8x128xf32>
    %103 = vector.shape_cast %100 : vector<8x128xf32> to vector<1x8x128xf32>
    tpu.vector_store %arg7[%c0_57, %c0_58, %c0_59], %103 {strides = array<i32>} : memref<1x8x128xf32, #tpu.memory_space<vmem>>, vector<1x8x128xf32>,
    return
  }
  func.func @transform_0(%arg0: i32, %arg1: i32) -> (i32, i32, i32, i32) {
    %c0_i32 = arith.constant 0 : i32
    %c0_i32_0 = arith.constant 0 : i32
    %c0_i32_1 = arith.constant 0 : i32
    return %arg0, %arg1, %c0_i32, %c0_i32_0 : i32, i32, i32, i32
  }
  func.func @transform_1(%arg0: i32, %arg1: i32) -> (i32, i32) {
    %c0_i32 = arith.constant 0 : i32
    %c0_i32_0 = arith.constant 0 : i32
    %c0_i32_1 = arith.constant 0 : i32
    return %c0_i32, %c0_i32_0 : i32, i32
  }
  func.func @transform_2(%arg0: i32, %arg1: i32) -> (i32, i32) {
    %c0_i32 = arith.constant 0 : i32
    %c0_i32_0 = arith.constant 0 : i32
    %c0_i32_1 = arith.constant 0 : i32
    return %c0_i32, %c0_i32_0 : i32, i32
  }
  func.func @transform_3(%arg0: i32, %arg1: i32) -> (i32, i32) {
    %c0_i32 = arith.constant 0 : i32
    %c0_i32_0 = arith.constant 0 : i32
    return %c0_i32, %arg1 : i32, i32
  }
  func.func @transform_4(%arg0: i32, %arg1: i32) -> (i32, i32) {
    %c0_i32 = arith.constant 0 : i32
    %c0_i32_0 = arith.constant 0 : i32
    %c0_i32_1 = arith.constant 0 : i32
    return %c0_i32, %c0_i32_0 : i32, i32
  }
  func.func @transform_5(%arg0: i32, %arg1: i32) -> (i32, i32, i32) {
    %c0_i32 = arith.constant 0 : i32
    %c0_i32_0 = arith.constant 0 : i32
    return %arg0, %c0_i32, %arg1 : i32, i32, i32
  }
}

</mosaic_0001>

<bundles_post_ra>
// kernel: tpu_custom_call.1
= control target key start
LH: loop header
LB: loop body
LE: loop exit
PB: predicated region body
PF: predicated region fallthrough
CT: control target
= control target key end

     0   :  { %s1995_s0 = inlined_call_operand.hbm [shape: bf16[2,2,8,384], index: 0, kind: input, shape index: {}]   ;;  %s1996_s1 = inlined_call_operand.vmem [shape: bf16[8,8], index: 1, kind: input, shape index: {}]   ;;  %s1997_s2 = inlined_call_operand.vmem [shape: f32[8,1], index: 2, kind: input, shape index: {}]   ;;  %s1998_s3 = inlined_call_operand.hbm [shape: f32[24,256], index: 3, kind: input, shape index: {}]   ;;  %s1999_s4 = inlined_call_operand.vmem [shape: f32[16,8], index: 4, kind: input, shape index: {}]   ;;  %s2000_s5 = inlined_call_operand.hbm [shape: f32[2,8,256], index: 5, kind: output, shape index: {}]  }
   0x1   :  { %2010 = sst [smem:[#allocation18_spill]] %s2000_s5 }
   0x2   :  { %10 = vsyncpa [#allocation4], 0 }
   0x3   :  { %12 = vsyncpa [#allocation4 + $0x1], 0 }
   0x4   :  { %13 = vsyncpa [#allocation7], 0 }
   0x5   :  { %15 = vsyncpa [#allocation7 + $0x1], 0 }
   0x6   :  { %16 = vsyncpa [#allocation5], 0 }
   0x7   :  { %18 = vsyncpa [#allocation5 + $0x1], 0  ;;  %s1510_s18 = smov 0   ;;  %s1512_s19 = smov 0  }
   0x8   :  { %s1514_s20 = smov 0   ;;  %s1516_s21 = smov 0  }
   0x9   :  { %s1518_s22 = smov 0   ;;  %s1520_s23 = smov 0  }
   0xa   :  { %s1522_s24 = smov 0   ;;  %s1524_s25 = smov 0  }
   0xb   :  { %s1526_s26 = smov 0   ;;  %s1528_s27 = smov 0  }
   0xc   :  { %s1530_s28 = smov 0  }
   0xd LB: > { %2011 = sst [smem:[#allocation12_spill]] %s1425_s23  ;;  %s1054_s29 = sadd.s32 4294967295, %s1445_s28   ;;  %s1445_s28 = sphi %s1530_s28, %s24_s28   ;;  %s1441_s27 = sphi %s1528_s27, %s2048_s27   ;;  %s1437_s26 = sphi %s1526_s26, %s2047_s26   ;;  %s1433_s25 = sphi %s1524_s25, %s2046_s25   ;;  %s1429_s24 = sphi %s1522_s24, %s2045_s24   ;;  %s1425_s23 = sphi %s1520_s23, %s2037_s23   ;;  %s1421_s22 = sphi %s1518_s22, %s2044_s22   ;;  %s1417_s21 = sphi %s1516_s21, %s2043_s21   ;;  %s1413_s20 = sphi %s1514_s20, %s2042_s20   ;;  %s1409_s19 = sphi %s1512_s19, %s2041_s19   ;;  %s1405_s18 = sphi %s1510_s18, %s2040_s18  }
   0xe   : > { %s1055_s30 = sadd.s32 4294967294, %s1445_s28   ;;  %s33_s6 = sadd.s32 1, %s1437_s26 }
   0xf   : > { %s36_s7 = sadd.s32 1, %s1441_s27  ;;  %p34_p0 = scmp.ge.s32.totalorder %s33_s6, 2 }
  0x10   : > { %s45_s8 = sadd.s32 1, %s1425_s23  ;;  %p52_p1 = scmp.ne.s32.totalorder %s1425_s23, %s1421_s22 }
  0x11   : > { %p53_p2 = scmp.eq.s32.totalorder %s1445_s28, 0  ;;  %s2050_s6 = smov (%p34_p0, %s33_s6), 0 }
  0x12   : > { %2012 = sst [smem:[#allocation13_spill]] %s2050_s6  ;;  %s2052_s7 = smov (!%p34_p0, %s36_s7), %s1441_s27 }
  0x13   : > { %s41_s9 = ssub.s32 %s1437_s26, %s2050_s6  ;;  %p1583_p3 = por %p53_p2, %p52_p1 }
  0x14   : > { %p38_p4 = scmp.ge.s32.totalorder %s2052_s7, 2  ;;  %p2003_p5 = scmp.ne.s32.totalorder %s1421_s22, %s1417_s21 }
  0x15   : > { %p1589_p6 = scmp.eq.s32.totalorder %s1054_s29, 0  ;;  %p111_p7 = scmp.eq.s32.totalorder %s41_s9, 0 }
  0x16   : > { %s2054_s7 = smov (%p38_p4, %s2052_s7), 0  ;;  %s113_s13 = sadd.s32 1, %s1413_s20 }
  0x17   : > { %2015 = sst [smem:[#allocation14_spill]] %s2054_s7  ;;  %p1600_p8 = por %p1589_p6, %p2003_p5 }
  0x18   : > { %s40_s14 = ssub.s32 %s1441_s27, %s2054_s7  ;;  %p120_p9 = scmp.ne.s32.totalorder %s1413_s20, %s1409_s19 }
  0x19   : > { %s2016_s12 = scalar_select %p1600_p8, 1, 0 }
  0x1a   : > { %s42_s15 = sor.u32 %s41_s9, %s40_s14  ;;  %p126_p10 = scmp.ne.s32.totalorder %s1409_s19, %s1405_s18 }
  0x1b   : > { %p43_p11 = scmp.eq.s32.totalorder %s42_s15, 0  ;;  %p1613_p12 = por %p120_p9, %p53_p2 }
  0x1c   : > { %s1618_s17 = scalar_select %p111_p7, %s1413_s20, %s113_s13  }
  0x1d   : > { %s1621_s6 = scalar_select %p43_p11, %s1425_s23, %s45_s8  }
  0x1e   : > { %2018 = sst [smem:[#allocation15_spill]] %s1618_s17  ;;  %p1625_p13 = por %p126_p10, %p1589_p6 }
  0x1f   : > { %2019 = sst [smem:[#allocation16_spill]] %s1621_s6  ;;  %p173_p0 = scmp.eq.s32.totalorder %s1054_s29, 3 }
  0x20   : > { %s2020_s5 = scalar_select %p1625_p13, 1, 0 }
  0x21   : > { %p179_p4 = scmp.eq.s32.totalorder %s1055_s30, 3  ;;  %p1632_p5 = por %p173_p0, %p52_p1 }
  0x22   : > { %p1113_p2 = scmp.lt.s32.totalorder %s1445_s28, 4  ;;  %p2022_p9 = scmp.ne.s32.totalorder %s1421_s22, %s1417_s21 }
  0x23   : > { %s2021_s18 = scalar_select %p1632_p5, 1, 0 }
  0x24   : > { %p1640_p7 = por %p179_p4, %p2022_p9  ;;  %s208_s8 = sand.u32 1, %s1425_s23  }
  0x25   : > { %s1090_s11 = smul.u32 12, %s208_s8  ;;  %p1648_p6 = pnand %p1113_p2, %p1583_p3 }
  0x26   : > { %s2023_s9 = scalar_select %p1640_p7, 1, 0 }
  0x27   : > { %s1091_s13 = smul.u32 3, %s1437_s26  ;;  %s212_s30 = scalar_lea.vmem [#allocation3], %s1090_s11 }
  0x28   : > { %2024 = sst [smem:[#allocation17_spill]] %s2023_s9  ;;  %s1092_s29 = smul.u32 6, %s1441_s27 }
  0x29   : > { %s222_s15 = sshll.u32 %s212_s30, 4  ;;  %p1657_p1 = pnand %p1113_p2, %p1613_p12  ;;  %s1653_s15 = int_to_ptr.vmem [resolvable:$true] %s222_s15 }
  0x2a   : > { %s218_s7 = sadd.s32 %s1092_s29, %s1091_s13  ;;  %s209_s11 = scalar_lea.sflag [#allocation4], %s208_s8 }
  0x2b   : > { %s1058_s6 = sshll.u32 %s218_s7, 6  ;;  %p1261_p11 = pneg %p1648_p6 }
  0x2c   : > { %s1664_s9 = scalar_lea.hbm %s1995_s0, %s1058_s6  ;;  %s1264_s23 = scalar_lea.hbm %s1995_s0, 768 }
  0x2d   : > { %s1259_s13 = scalar_lea.hbm %s1664_s9, 192  ;;  %p1265_p4 = scmp.lt.u32.totalorder %s1664_s9, %s1995_s0 }
  0x2e   : > { %p1260_p10 = scmp.ne.s32.totalorder %s1664_s9, %s1259_s13  ;;  %p1266_p2 = scmp.lt.u32.totalorder %s1264_s23, %s1259_s13 }
  0x2f   : > { %p1268_p3 = scmp.lt.u32.totalorder %s1259_s13, %s1664_s9 }
  0x30   : > { %p1262_p12 = pnand %p1261_p11, %p1260_p10  ;;  %p1267_p9 = por %p1266_p2, %p1265_p4 }
  0x32   : > { %p1263_p0 = pneg %p1262_p12  ;;  %p1269_p7 = por %p1268_p3, %p1267_p9 }
  0x34   : > { %p1270_p5 = pnand %p1269_p7, %p1263_p0 }
  0x36   : > { %1273 = shalt.err (!%p1270_p5)
}
  0x37   : > { %s1274_s8 = scalar_lea.vmem %s1653_s15, 192  ;;  %s1447_s30 = smov [#allocation3]  }
  0x38   : > { %p1275_p10 = scmp.ne.s32.totalorder %s1653_s15, %s1274_s8  ;;  %s1279_s10 = sshll.u32 %s1447_s30, 4  ;;  %s1280_s10 = int_to_ptr.vmem [resolvable:$false] %s1279_s10 }
  0x39   : > { %s1281_s7 = scalar_lea.vmem %s1280_s10, 384  ;;  %p1282_p8 = scmp.lt.s32.totalorder %s1653_s15, %s1280_s10 }
  0x3a   : > { %p1277_p12 = pnand %p1275_p10, %p1261_p11  ;;  %p1283_p4 = scmp.lt.s32.totalorder %s1281_s7, %s1274_s8 }
  0x3c   : > { %p1278_p13 = pneg %p1277_p12  ;;  %p1284_p2 = por %p1283_p4, %p1282_p8 }
  0x3e   : > { %p1285_p3 = pnand %p1284_p2, %p1278_p13 }
  0x40   : > { %1288 = shalt.err (!%p1285_p3)
}
  0x41   : > { %1105 = dma.hbm_to_vmem [thread:$0]  (!%p1648_p6), %s1664_s9, 192, %s1653_s15, %s209_s11  }
  0x42   : > { %p247_p5 = scmp.lt.s32.totalorder %s1445_s28, 5  ;;  %s229_s13 = sand.u32 1, %s1413_s20  }
  0x43   : > { %s1059_s16 = sshll.u32 %s1437_s26, 7  ;;  %p2027_p7 = scmp.ge.s32.totalorder %s1445_s28, 1 }
  0x44   : > { %s1093_s6 = smul.u32 24, %s229_s13  ;;  %s1704_s8 = scalar_lea.hbm %s1998_s3, %s1059_s16 }
  0x45   : > { %p1697_p11 = pnand %p2027_p7, %p247_p5  ;;  %s1708_s15 = scalar_lea.sflag [#allocation7], %s229_s13 }
  0x46   : > { %s233_s30 = scalar_lea.vmem [#allocation6], %s1093_s6  ;;  %s1289_s11 = scalar_lea.hbm %s1704_s8, 384 }
  0x47   : > { %s239_s9 = sshll.u32 %s233_s30, 4  ;;  %p1290_p8 = scmp.ne.s32.totalorder %s1704_s8, %s1289_s11  ;;  %s1706_s9 = int_to_ptr.vmem [resolvable:$true] %s239_s9 }
  0x48   : > { %p1291_p13 = pneg %p1657_p1  ;;  %s1294_s16 = scalar_lea.hbm %s1998_s3, 768 }
  0x49   : > { %p1295_p9 = scmp.lt.u32.totalorder %s1704_s8, %s1998_s3  ;;  %p1296_p10 = scmp.lt.u32.totalorder %s1294_s16, %s1289_s11 }
  0x4a   : > { %p1292_p6 = pnand %p1291_p13, %p1290_p8  ;;  %p1298_p4 = scmp.lt.u32.totalorder %s1289_s11, %s1704_s8 }
  0x4b   : > { %p1297_p12 = por %p1296_p10, %p1295_p9 }
  0x4c   : > { %p1293_p0 = pneg %p1292_p6 }
  0x4d   : > { %p1299_p2 = por %p1298_p4, %p1297_p12 }
  0x4f   : > { %p1300_p3 = pnand %p1299_p2, %p1293_p0 }
  0x51   : > { %1303 = shalt.err (!%p1300_p3)
}
  0x52   : > { %s1304_s13 = scalar_lea.vmem %s1706_s9, 384  ;;  %s1448_s6 = smov [#allocation6]  }
  0x53   : > { %p1305_p5 = scmp.ne.s32.totalorder %s1706_s9, %s1304_s13  ;;  %s1309_s30 = sshll.u32 %s1448_s6, 4  ;;  %s1310_s30 = int_to_ptr.vmem [resolvable:$false] %s1309_s30 }
  0x54   : > { %s1311_s10 = scalar_lea.vmem %s1310_s30, 768  ;;  %p1312_p6 = scmp.lt.s32.totalorder %s1706_s9, %s1310_s30 }
  0x55   : > { %p1307_p7 = pnand %p1305_p5, %p1291_p13  ;;  %p1313_p9 = scmp.lt.s32.totalorder %s1311_s10, %s1304_s13 }
  0x57   : > { %p1308_p8 = pneg %p1307_p7  ;;  %p1314_p10 = por %p1313_p9, %p1312_p6 }
  0x59   : > { %p1315_p12 = pnand %p1314_p10, %p1308_p8 }
  0x5b   : > { %1318 = shalt.err (!%p1315_p12)
}
  0x5c   : > { %s1449_s11 = smov 256   ;;  %s1450_s7 = smov 128  }
  0x5d   : > { %s1451_s16 = smov 8   ;;  %251 = sbr.rel (%p1697_p11) target bundleno = 848 (0x350), region = 40 }
  0x5e   : > { %1108 = dma.hbm_to_vmem [thread:$0]  (!%p1657_p1), %s1704_s8, 384, %s1706_s9, %s1708_s15, %s1449_s11, %s1450_s7, %s1451_s16  }
  0x5f   : > { %s1739_s29 = sand.u32 (!%p1697_p11), 1, %s1421_s22   ;;  %p2029_p13 = scmp.ne.s32.totalorder (!%p1697_p11), %s2016_s12, 0 }
  0x60   : > { %s1094_s14 = smul.u32 (!%p1697_p11), 12, %s1739_s29  ;;  %s254_s13 = scalar_lea.sflag (!%p1697_p11), [#allocation4], %s1739_s29 }
  0x62   : > { %s257_s6 = scalar_lea.vmem (!%p1697_p11), [#allocation3], %s1094_s14 }
  0x64   : > { %1392 = dma.done.wait (%p2029_p13), %s254_s13, 192  }
  0x65   : > { %1394 = vsyncadd (%p2029_p13), %s254_s13, 4294967104  ;;  %s262_s17 = sand.u32 1, %s1409_s19   ;;  %p2030_p1 = scmp.ne.s32.totalorder %s2020_s5, 0 }
  0x66   : > { %s1095_s8 = smul.u32 24, %s262_s17  ;;  %s263_s23 = scalar_lea.sflag [#allocation7], %s262_s17 }
  0x68   : > { %s1748_s9 = scalar_lea.vmem [#allocation6], %s1095_s8 }
  0x69   : > { %1396 = dma.done.wait (%p2030_p1), %s263_s23, 384  }
  0x6a   : > { %1398 = vsyncadd (%p2030_p1), %s263_s23, 4294966912  ;;  %v1452_v0 = vmov 0.0   ;;  %v1453_v1 = vmov 0   ;;  %vm1454_vm0 = vmmov 0   ;;  %v1455_v2 = vmov 1   ;;  %v300_v3 = vld [vmem:[%s257_s6] sm:$0xff] }
  0x6b   : > { %1084 = vmatprep.subr.bf16.mxu1 %v1452_v0  ;;  %547 = vst [vmem:[#allocation2 + $0x10] sm:$0xc0] %v1452_v0  ;;  %362 = vmatprep.mubr.bf16.mxu0 %v1453_v1  ;;  %vm320_vm1 = vcmask 1043456   ;;  %v1250_v4 = vld [vmem:[%s257_s6 + $0x8] ss:$0 sps:$4 sm:$0xff]   ;;  %v1063_v5 = vcombine.high %v300_v3, %v300_v3  ;;  %v1062_v6 = vcombine.low %v300_v3, %v300_v3  ;;  %v302_v7 = vld [vmem:[%s1997_s2] sm:$0xff] }
  0x6c   : > { %1086 = vmatprep.mubr.msk.bf16.mxu1 %vm1454_vm0, %v1452_v0  ;;  %1233 = vset.pattern.permute.xlu0 %v1453_v1  ;;  %v1765_v8 = vld [vmem:[%s1999_s4 + $0x8] sm:$0xff]  ;;  %v328_v9 = vsel %vm320_vm1, %v1250_v4, 0  ;;  %v299_v11 = vld [vmem:[%s1996_s1] sm:$0xf]  ;;  %vm316_vm2 = vcmask 64512   ;;  %v1456_v13 = vmov 2  }
  0x6d   : > { %1235 = vset.pattern.permute.xlu1 %v1455_v2  ;;  %305 = vperm.xlu0 %1233, %v302_v7   ;;  %v322_v10 = vsel %vm320_vm1, %v1062_v6, 0  ;;  %v1774_v12 = vld [vmem:[%s1999_s4] sm:$0xff]  ;;  %v1457_v14 = vmov 3   ;;  %s1458_s14 = smov 2   ;;  %v1459_v16 = vmov 4   ;;  %s1460_s13 = smov 3  }
  0x6e   : > { %606 = vperm.xlu1 %1235, %v1765_v8   ;;  %1065 = vmatprep.subr.msk.bf16.mxu0 %vm320_vm1, %v1063_v5  ;;  %v1069_v15 = vld [vmem:[%s1748_s9 + $0x11] ss:$0 sm:$0xff]  ;;  %v1070_v17 = vld [vmem:[%s1748_s9 + $0x12] ss:$0 sm:$0xff]  ;;  %v1461_v18 = vmov 5   ;;  %vm454_vm3 = vcmask 1040384  }
  0x6f   : > { %1085 = vmatpush3.bf16.msra.mxu1 %v328_v9  ;;  %331 = vmatpush1.bf16.msra.mxu0 %v322_v10  ;;  %s1462_s6 = smov 123   ;;  %s1463_s17 = smov 31   ;;  %vm513_vm4 = vcmask 64518   ;;  %vm469_vm5 = vcmask 58368   ;;  %vm464_vm6 = vcmask 252928   ;;  %vm519_vm7 = vcmask 1006592  }
  0x70   : > { %s1464_s8 = smov 22   ;;  %548 = vst.msk [vmem:[#allocation2 + $0x18] sm:$0xc0] %vm513_vm4, %v1452_v0  ;;  %s1465_s23 = smov 13   ;;  %vm482_vm8 = vcmask 60418   ;;  %vm477_vm9 = vcmask 179200  }
  0x71   : > { %1234 = vset.pattern.permute.xlu0 %v1455_v2  ;;  %s1466_s5 = smov 4   ;;  %s1467_s12 = smov 114   ;;  %vm495_vm10 = vcmask 62468   ;;  %vm490_vm11 = vcmask 105472   ;;  %vm507_vm12 = vcmask 31744   ;;  %vm530_vm13 = vcmask 932864  }
  0x72   : > { %1087 = vmatmul.mubr.msk.bf16.vlgmr.msra.gmra.mrb[0].mxu1 %vm316_vm2, %v299_v11  ;;  %1236 = vset.pattern.permute.xlu1 %v1456_v13  ;;  %s1468_s15 = smov 105   ;;  %s1470_s30 = smov 7   ;;  %vm541_vm14 = vcmask 859136   ;;  %vm625_vm15 = vcmask 1039360   ;;  %vm673_vm0 = vcmask 1031168   ;;  %vm721_vm1 = vcmask 1022976  }
  0x73   : > { %1066 = vmatmul.mubr.msk.bf16.vlgmr.msra.gmra.mrb[0].mxu0 %vm316_vm2, %v299_v11  ;;  %650 = vperm.xlu1 %1236, %v1774_v12   ;;  %s1471_s10 = smov 5   ;;  %s1472_s11 = smov 6   ;;  %vm769_vm2 = vcmask 1014784  }
  0x74   : > { %602 = vperm.xlu0 %1234, %v1774_v12   ;;  %s1473_s7 = smov 1   ;;  %s1474_s16 = smov 127  }
  0x75   : > { %p2032_p0 = scmp.ne.s32.totalorder %s2021_s18, 0 }
  0x77   : > { %1238 = vset.pattern.permute.xlu1 %v1457_v14 }
  0x78   : > { %698 = vperm.xlu1 %1238, %v1774_v12   ;;  %1237 = vset.pattern.permute.xlu0 %v1456_v13 }
  0x79   : > { %654 = vperm.xlu0 %1237, %v1765_v8  }
  0x7c   : > { %702 = vperm.xlu1 %1238, %v1765_v8  }
  0x7d   : > { %594 = vrot.lane.b32.xlu0 %v1069_v15, %s1458_s14  ;;  %s1475_s14 = smov 126  }
  0x7e   : > { %1240 = vset.pattern.permute.xlu0 %v1459_v16 }
  0x80   : > { %1239 = vset.pattern.permute.xlu1 %v1459_v16 }
  0x81   : > { %746 = vperm.xlu1 %1239, %v1774_v12   ;;  %750 = vperm.xlu0 %1240, %v1765_v8  }
  0x85   : > { %642 = vrot.lane.b32.xlu1 %v1070_v17, %s1460_s13  ;;  %1242 = vset.pattern.permute.xlu0 %v1461_v18  ;;  %s1476_s13 = smov 125  }
  0x86   : > { %1241 = vset.pattern.permute.xlu1 %v1461_v18 }
  0xec   : > { %v306_v19 = vpop.permute.xlu0 %305 }
 0x145   : > { %v405_v20 = vpop.f32.mrb[0].mxu1 }
 0x146   : > { %v364_v21 = vpop.f32.mrb[0].mxu0  ;;  %v406_v22 = vadd.f32 %v405_v20, %v306_v19  ;;  %v1088_v23 = vpop.f32.mrb[1].mxu1 }
 0x147   : > { %v365_v24 = vadd.f32 %v364_v21, %v306_v19  ;;  %v366_v25 = vpop.f32.mrb[1].mxu0  ;;  %v408_v26 = vpop.f32.mrb[2].mxu1  ;;  %v1469_v21 = vmov 6   ;;  %v1074_v23 = vld [vmem:[%s1748_s9 + $0x16] ss:$0 sm:$0xff] }
 0x148   : > { %v413_v27 = vmax.f32 %v406_v22, 0.0  ;;  %v367_v28 = vadd.f32 %v366_v25, %v306_v19  ;;  %v368_v29 = vpop.f32.mrb[2].mxu0  ;;  %v1089_v30 = vpop.f32.mrb[3].mxu1  ;;  %v1071_v22 = vld [vmem:[%s1748_s9 + $0x13] ss:$0 sm:$0xff] }
 0x149   : > { %v411_v31 = vmax.f32 %v365_v24, 0.0  ;;  %v369_v32 = vpop.f32.mrb[3].mxu0  ;;  %v1072_v24 = vld [vmem:[%s1748_s9 + $0x14] ss:$0 sm:$0xff]  ;;  %v1073_v25 = vld [vmem:[%s1748_s9 + $0x15] ss:$0 sm:$0xff] }
 0x14a   : > { %v426_v33 = vrot.slane %v413_v27, 4  ;;  %v1785_v34 = vmax.f32 %v367_v28, 0.0  ;;  %v1068_v26 = vld [vmem:[%s1748_s9 + $0x10] ss:$0 sm:$0xff] }
 0x14b   : > { %v414_v35 = vrot.slane %v411_v31, 4 }
 0x14c   : > { %v427_v36 = vadd.f32 %v426_v33, %v413_v27  ;;  %v449_v37 = vmax.f32 %v413_v27, %v426_v33  ;;  %v420_v38 = vrot.slane %v1785_v34, 4  ;;  %v1811_v27 = vpop.permute.xlu1 %606 }
 0x14d   : > { %v415_v39 = vadd.f32 %v414_v35, %v411_v31  ;;  %v437_v40 = vmax.f32 %v411_v31, %v414_v35 }
 0x14e   : > { %v428_v41 = vrot.slane %v427_v36, 2  ;;  %v450_v42 = vrot.slane %v449_v37, 2  ;;  %v421_v43 = vadd.f32 %v420_v38, %v1785_v34  ;;  %v443_v44 = vmax.f32 %v1785_v34, %v420_v38 }
 0x14f   : > { %v416_v45 = vrot.slane %v415_v39, 2  ;;  %v438_v46 = vrot.slane %v437_v40, 2 }
 0x150   : > { %v429_v47 = vadd.f32 %v428_v41, %v427_v36  ;;  %v451_v48 = vmax.f32 %v449_v37, %v450_v42  ;;  %v422_v49 = vrot.slane %v421_v43, 2  ;;  %v444_v50 = vrot.slane %v443_v44, 2  ;;  %v1813_v28 = vpop.permute.xlu1 %650 }
 0x151   : > { %v417_v51 = vadd.f32 %v416_v45, %v415_v39  ;;  %v439_v52 = vmax.f32 %v437_v40, %v438_v46 }
 0x152   : > { %v430_v53 = vrot.slane %v429_v47, 1  ;;  %v452_v54 = vrot.slane %v451_v48, 1  ;;  %v423_v55 = vadd.f32 %v422_v49, %v421_v43  ;;  %v445_v56 = vmax.f32 %v443_v44, %v444_v50 }
 0x153   : > { %v418_v57 = vrot.slane %v417_v51, 1  ;;  %v440_v58 = vrot.slane %v439_v52, 1 }
 0x154   : > { %v431_v59 = vadd.f32 %v430_v53, %v429_v47  ;;  %v424_v60 = vrot.slane %v423_v55, 1  ;;  %v453_v63 = vmax.f32 %v451_v48, %v452_v54  ;;  %v446_v3 = vrot.slane %v445_v56, 1  ;;  %v1815_v29 = vpop.permute.xlu1 %698 }
 0x155   : > { %v419_v61 = vadd.f32 %v418_v57, %v417_v51  ;;  %v441_v5 = vmax.f32 %v439_v52, %v440_v58 }
 0x156   : > { %v435_v62 = vmul.f32 0.125, %v431_v59  ;;  %v425_v2 = vadd.f32 %v424_v60, %v423_v55  ;;  %v447_v10 = vmax.f32 %v445_v56, %v446_v3 }
 0x157   : > { %v433_v4 = vmul.f32 0.125, %v419_v61 }
 0x158   : > { %v457_v6 = vsel %vm454_vm3, %v435_v62, %v453_v63  ;;  %v434_v7 = vmul.f32 0.125, %v425_v2  ;;  %v1819_v30 = vpop.permute.xlu1 %702 }
 0x159   : > { %517 = vrot.lane.b32.xlu1 %v457_v6, %s1462_s6  ;;  %v455_v9 = vsel %vm454_vm3, %v433_v4, %v441_v5  ;;  %v500_v19 = vrot.slane %v457_v6, 2  ;;  %v525_v20 = vrot.slane %v457_v6, 6  ;;  %v536_v0 = vrot.slane %v457_v6, 4 }
 0x15a   : > { %460 = vrot.lane.b32.xlu0 %v455_v9, %s1463_s17  ;;  %v456_v11 = vsel %vm454_vm3, %v434_v7, %v447_v10  ;;  %v471_v13 = vrot.slane %v455_v9, 6  ;;  %v484_v15 = vrot.slane %v455_v9, 4  ;;  %v498_v17 = vrot.slane %v455_v9, 2 }
 0x15b   : > { %v472_v14 = vrot.slane %v456_v11, 6  ;;  %v485_v16 = vrot.slane %v456_v11, 4  ;;  %v499_v18 = vrot.slane %v456_v11, 2  ;;  %vm864_vm3 = vcmask 998400  }
 0x15c   : > { %v1823_v31 = vpop.permute.xlu1 %746 }
 0x15d   : > { %462 = vrot.lane.b32.xlu1 %v456_v11, %s1463_s17  ;;  %s1477_s17 = smov 124  }
 0x15e   : > { %515 = vrot.lane.b32.xlu0 %v456_v11, %s1462_s6 }
 0x161   : > { %473 = vrot.lane.b32.xlu1 %v471_v13, %s1464_s8 }
 0x162   : > { %475 = vrot.lane.b32.xlu0 %v472_v14, %s1464_s8  ;;  %s1478_s8 = smov 122  }
 0x165   : > { %486 = vrot.lane.b32.xlu1 %v484_v15, %s1465_s23 }
 0x166   : > { %488 = vrot.lane.b32.xlu0 %v485_v16, %s1465_s23 }
 0x169   : > { %501 = vrot.lane.b32.xlu1 %v498_v17, %s1466_s5 }
 0x16a   : > { %503 = vrot.lane.b32.xlu0 %v499_v18, %s1466_s5 }
 0x16d   : > { %505 = vrot.lane.b32.xlu1 %v500_v19, %s1466_s5 }
 0x16e   : > { %526 = vrot.lane.b32.xlu0 %v472_v14, %s1467_s12 }
 0x171   : > { %528 = vrot.lane.b32.xlu1 %v525_v20, %s1467_s12 }
 0x172   : > { %537 = vrot.lane.b32.xlu0 %v485_v16, %s1468_s15 }
 0x175   : > { %539 = vrot.lane.b32.xlu1 %v536_v0, %s1468_s15 }
 0x176   : > { %798 = vperm.xlu0 %1242, %v1765_v8  }
 0x179   : > { %794 = vperm.xlu1 %1241, %v1774_v12  }
 0x17a   : > { %1244 = vset.pattern.permute.xlu0 %v1469_v21 }
 0x17b   : > { %845 = vperm.xlu0 %1244, %v1765_v8  }
 0x17d   : > { %690 = vrot.lane.b32.xlu1 %v1071_v22, %s1466_s5 }
 0x17e   : > { %1243 = vset.pattern.permute.xlu1 %v1469_v21 }
 0x17f   : > { %833 = vrot.lane.b32.xlu0 %v1074_v23, %s1470_s30 }
 0x180   : > { %1246 = vset.pattern.permute.xlu0 %v1453_v1 }
 0x181   : > { %841 = vperm.xlu1 %1243, %v1774_v12  }
 0x183   : > { %577 = vperm.xlu0 %1246, %v1765_v8   ;;  %v1817_v8 = vpop.permute.xlu0 %602 }
 0x185   : > { %738 = vrot.lane.b32.xlu1 %v1072_v24, %s1471_s10 }
 0x186   : > { %1245 = vset.pattern.permute.xlu1 %v1453_v1 }
 0x187   : > { %1247 = vset.pattern.permute.xlu0 %v1469_v21  ;;  %v1821_v1 = vpop.permute.xlu0 %654 }
 0x189   : > { %786 = vrot.lane.b32.xlu1 %v1073_v25, %s1472_s11  ;;  %s2031_s11 = sld [smem:[#allocation18_spill]] }
 0x18b   : > { %v1825_v32 = vpop.permute.xlu0 %594 }
 0x18d   : > { %572 = vperm.xlu1 %1245, %v1774_v12   ;;  %v1827_v12 = vpop.permute.xlu1 %642 }
 0x18f   : > { %v1829_v33 = vpop.permute.xlu0 %750 }
 0x191   : > { %563 = vrot.lane.b32.xlu1 %v1068_v26, %s1473_s7 }
 0x1cb   : > { %v518_v35 = vpop.permute.xlu1 %517 }
 0x1cc   : > { %524 = vst.msk [vmem:[#allocation2 + $0x18] sm:$0x3] %vm469_vm5, %v518_v35  ;;  %v461_v36 = vpop.permute.xlu0 %460 }
 0x1cf   : > { %v463_v37 = vpop.permute.xlu1 %462 }
 0x1d0   : > { %v465_v38 = vsel %vm464_vm6, %v461_v36, %v463_v37  ;;  %470 = vst.msk [vmem:[#allocation2 + $0x8] sm:$0x3] %vm469_vm5, %v463_v37  ;;  %v516_v39 = vpop.permute.xlu0 %515  ;;  %vm897_vm5 = vcmask 7168  }
 0x1d1   : > { %468 = vst [vmem:[#allocation2] sm:$0x3] %v465_v38  ;;  %v520_v40 = vsel %vm519_vm7, %v516_v39, %v518_v35 }
 0x1d2   : > { %523 = vst [vmem:[#allocation2 + $0x10] sm:$0x3] %v520_v40 }
 0x1d3   : > { %v474_v41 = vpop.permute.xlu1 %473 }
 0x1d4   : > { %v476_v42 = vpop.permute.xlu0 %475 }
 0x1d5   : > { %483 = vst.msk [vmem:[#allocation2 + $0x8] sm:$0xc] %vm482_vm8, %v476_v42  ;;  %v478_v43 = vsel %vm477_vm9, %v474_v41, %v476_v42 }
 0x1d6   : > { %481 = vst [vmem:[#allocation2] sm:$0xc] %v478_v43 }
 0x1d7   : > { %v487_v44 = vpop.permute.xlu1 %486 }
 0x1d8   : > { %v489_v45 = vpop.permute.xlu0 %488 }
 0x1d9   : > { %496 = vst.msk [vmem:[#allocation2 + $0x8] sm:$0x30] %vm495_vm10, %v489_v45  ;;  %v491_v46 = vsel %vm490_vm11, %v487_v44, %v489_v45 }
 0x1da   : > { %494 = vst [vmem:[#allocation2] sm:$0x30] %v491_v46 }
 0x1db   : > { %v502_v47 = vpop.permute.xlu1 %501 }
 0x1dc   : > { %v504_v48 = vpop.permute.xlu0 %503 }
 0x1dd   : > { %v508_v49 = vsel %vm507_vm12, %v502_v47, %v504_v48 }
 0x1de   : > { %512 = vst [vmem:[#allocation2] sm:$0xc0] %v508_v49 }
 0x1df   : > { %v506_v50 = vpop.permute.xlu1 %505 }
 0x1e0   : > { %v509_v51 = vsel %vm507_vm12, %v504_v48, %v506_v50  ;;  %v527_v52 = vpop.permute.xlu0 %526 }
 0x1e1   : > { %514 = vst.msk [vmem:[#allocation2 + $0x8] sm:$0xc0] %vm513_vm4, %v509_v51  ;;  %vm887_vm4 = vcmask 1047560  }
 0x1e3   : > { %v529_v53 = vpop.permute.xlu1 %528 }
 0x1e4   : > { %v531_v54 = vsel %vm530_vm13, %v527_v52, %v529_v53  ;;  %535 = vst.msk [vmem:[#allocation2 + $0x18] sm:$0xc] %vm482_vm8, %v529_v53  ;;  %v538_v57 = vpop.permute.xlu0 %537 }
 0x1e5   : > { %534 = vst [vmem:[#allocation2 + $0x10] sm:$0xc] %v531_v54  ;;  %v1836_v55 = vld [vmem:[#allocation2] sm:$0xff] }
 0x1e6   : > { %v597_v56 = vmul.f32 %v1825_v32, %v1836_v55  ;;  %v645_v6 = vmul.f32 %v1827_v12, %v1836_v55 }
 0x1e7   : > { %v540_v58 = vpop.permute.xlu1 %539 }
 0x1e8   : > { %v542_v59 = vsel %vm541_vm14, %v538_v57, %v540_v58  ;;  %546 = vst.msk [vmem:[#allocation2 + $0x18] sm:$0x30] %vm495_vm10, %v540_v58  ;;  %v609_v60 = vmul.f32 %v1817_v8, %v597_v56  ;;  %v657_v9 = vmul.f32 %v1813_v28, %v645_v6  ;;  %v552_v39 = vld [vmem:[#allocation2 + $0x8] sm:$0xff]  ;;  %v549_v56 = vld [vmem:[%s1748_s9] sm:$0xff] }
 0x1e9   : > { %545 = vst [vmem:[#allocation2 + $0x10] sm:$0x30] %v542_v59  ;;  %v598_v43 = vmul.f32 %v1825_v32, %v552_v39  ;;  %v646_v47 = vmul.f32 %v1827_v12, %v552_v39 }
 0x1ea   : > { %617 = vrot.lane.b32.xlu1 %v609_v60, %s1474_s16 }
 0x1eb   : > { %v610_v46 = vmul.f32 %v1817_v8, %v598_v43  ;;  %v658_v49 = vmul.f32 %v1813_v28, %v646_v47 }
 0x1ef   : > { %v1843_v61 = vld [vmem:[#allocation2 + $0x18] sm:$0xff] }
 0x1f0   : > { %v600_v62 = vmul.f32 %v1825_v32, %v1843_v61  ;;  %v1847_v63 = vld [vmem:[#allocation2 + $0x10] sm:$0xff]  ;;  %v648_v4 = vmul.f32 %v1827_v12, %v1843_v61 }
 0x1f1   : > { %v599_v2 = vmul.f32 %v1825_v32, %v1847_v63  ;;  %v647_v10 = vmul.f32 %v1827_v12, %v1847_v63 }
 0x1f2   : > { %v612_v3 = vmul.f32 %v1811_v27, %v600_v62  ;;  %v660_v7 = vmul.f32 %v1821_v1, %v648_v4 }
 0x1f3   : > { %v611_v5 = vmul.f32 %v1811_v27, %v599_v2  ;;  %v659_v13 = vmul.f32 %v1821_v1, %v647_v10 }
 0x1f4   : > { %623 = vrot.lane.b32.xlu0 %v612_v3, %s1474_s16 }
 0x1f5   : > { %621 = vrot.lane.b32.xlu1 %v611_v5, %s1474_s16  ;;  %v799_v14 = vpop.permute.xlu0 %798 }
 0x1f8   : > { %671 = vrot.lane.b32.xlu0 %v660_v7, %s1475_s14  ;;  %v1864_v11 = vpop.permute.xlu1 %794 }
 0x1f9   : > { %665 = vrot.lane.b32.xlu1 %v657_v9, %s1475_s14 }
 0x1fa   : > { %v846_v21 = vpop.permute.xlu0 %845 }
 0x1fc   : > { %v691_v15 = vpop.permute.xlu1 %690 }
 0x1fd   : > { %v693_v16 = vmul.f32 %v691_v15, %v1836_v55  ;;  %v696_v17 = vmul.f32 %v691_v15, %v1843_v61  ;;  %669 = vrot.lane.b32.xlu1 %v659_v13, %s1475_s14  ;;  %v695_v18 = vmul.f32 %v691_v15, %v1847_v63  ;;  %v694_v32 = vmul.f32 %v691_v15, %v552_v39 }
 0x1fe   : > { %v834_v1 = vpop.permute.xlu0 %833 }
 0x1ff   : > { %v708_v20 = vmul.f32 %v1819_v30, %v696_v17  ;;  %v705_v0 = vmul.f32 %v1815_v29, %v693_v16  ;;  %v707_v23 = vmul.f32 %v1819_v30, %v695_v18  ;;  %v839_v30 = vmul.f32 %v834_v1, %v1843_v61 }
 0x200   : > { %v842_v19 = vpop.permute.xlu1 %841  ;;  %v838_v50 = vmul.f32 %v834_v1, %v1847_v63  ;;  %v706_v12 = vmul.f32 %v1815_v29, %v694_v32  ;;  %v837_v28 = vmul.f32 %v834_v1, %v552_v39  ;;  %v550_v29 = vld [vmem:[%s1748_s9 + $0x8] sm:$0xff]  ;;  %s1061_s9 = sshll.u32 %s1739_s29, 3 }
 0x201   : > { %719 = vrot.lane.b32.xlu0 %v708_v20, %s1476_s13  ;;  %713 = vrot.lane.b32.xlu1 %v705_v0, %s1476_s13  ;;  %v851_v42 = vmul.f32 %v846_v21, %v839_v30  ;;  %s297_s12 = scalar_lea.vmem [#allocation8], %s1061_s9 }
 0x202   : > { %v850_v52 = vmul.f32 %v846_v21, %v838_v50  ;;  %v849_v58 = vmul.f32 %v842_v19, %v837_v28  ;;  %s945_s15 = sshll.u32 %s297_s12, 4  ;;  %s1934_s15 = int_to_ptr.vmem [resolvable:$true] %s945_s15 }
 0x204   : > { %v739_v22 = vpop.permute.xlu1 %738 }
 0x205   : > { %v741_v24 = vmul.f32 %v739_v22, %v1836_v55  ;;  %v744_v25 = vmul.f32 %v739_v22, %v1843_v61  ;;  %717 = vrot.lane.b32.xlu1 %v707_v23, %s1476_s13  ;;  %v743_v35 = vmul.f32 %v739_v22, %v1847_v63  ;;  %v742_v8 = vmul.f32 %v739_v22, %v552_v39 }
 0x207   : > { %v756_v26 = vmul.f32 %v1829_v33, %v744_v25  ;;  %v753_v27 = vmul.f32 %v1823_v31, %v741_v24  ;;  %v755_v41 = vmul.f32 %v1829_v33, %v743_v35  ;;  %v836_v33 = vmul.f32 %v834_v1, %v1836_v55 }
 0x208   : > { %v787_v36 = vpop.permute.xlu1 %786  ;;  %v754_v54 = vmul.f32 %v1823_v31, %v742_v8  ;;  %v578_v31 = vpop.permute.xlu0 %577 }
 0x209   : > { %v792_v37 = vmul.f32 %v787_v36, %v1843_v61  ;;  %767 = vrot.lane.b32.xlu0 %v756_v26, %s1477_s17  ;;  %761 = vrot.lane.b32.xlu1 %v753_v27, %s1477_s17  ;;  %v789_v40 = vmul.f32 %v787_v36, %v1836_v55  ;;  %v791_v44 = vmul.f32 %v787_v36, %v1847_v63 }
 0x20a   : > { %v848_v51 = vmul.f32 %v842_v19, %v836_v33  ;;  %v790_v53 = vmul.f32 %v787_v36, %v552_v39 }
 0x20b   : > { %v804_v38 = vmul.f32 %v799_v14, %v792_v37  ;;  %v801_v45 = vmul.f32 %v1864_v11, %v789_v40  ;;  %v803_v48 = vmul.f32 %v799_v14, %v791_v44 }
 0x20c   : > { %v802_v57 = vmul.f32 %v1864_v11, %v790_v53  ;;  %v573_v59 = vpop.permute.xlu1 %572 }
 0x20d   : > { %815 = vrot.lane.b32.xlu0 %v804_v38, %s1462_s6  ;;  %765 = vrot.lane.b32.xlu1 %v755_v41, %s1477_s17 }
 0x210   : > { %v564_v60 = vpop.permute.xlu1 %563 }
 0x211   : > { %862 = vrot.lane.b32.xlu0 %v851_v42, %s1478_s8  ;;  %809 = vrot.lane.b32.xlu1 %v801_v45, %s1462_s6  ;;  %v567_v0 = vmul.f32 %v564_v60, %v552_v39  ;;  %v566_v21 = vmul.f32 %v564_v60, %v1836_v55  ;;  %v568_v22 = vmul.f32 %v564_v60, %v1847_v63 }
 0x212   : > { %v569_v23 = vmul.f32 %v564_v60, %v1843_v61 }
 0x213   : > { %v581_v25 = vmul.f32 %v573_v59, %v567_v0  ;;  %v580_v1 = vmul.f32 %v573_v59, %v566_v21  ;;  %v582_v36 = vmul.f32 %v578_v31, %v568_v22 }
 0x214   : > { %v583_v37 = vmul.f32 %v578_v31, %v569_v23 }
 0x215   : > { %619 = vrot.lane.b32.xlu0 %v610_v46, %s1474_s16  ;;  %813 = vrot.lane.b32.xlu1 %v803_v48, %s1462_s6 }
 0x219   : > { %667 = vrot.lane.b32.xlu0 %v658_v49, %s1475_s14  ;;  %856 = vrot.lane.b32.xlu1 %v848_v51, %s1478_s8 }
 0x21d   : > { %715 = vrot.lane.b32.xlu0 %v706_v12, %s1476_s13  ;;  %860 = vrot.lane.b32.xlu1 %v850_v52, %s1478_s8 }
 0x221   : > { %763 = vrot.lane.b32.xlu0 %v754_v54, %s1477_s17  ;;  %877 = vrot.lane.b32.xlu1 %v549_v56, %s1473_s7 }
 0x225   : > { %811 = vrot.lane.b32.xlu0 %v802_v57, %s1462_s6  ;;  %s1078_s6 = sshll.u32 %s1433_s25, 1  ;;  %s1319_s25 = scalar_lea.vmem %s1934_s15, 128 }
 0x226   : > { %s941_s23 = sadd.s32 %s1429_s24, %s1078_s6  ;;  %s930_s24 = scalar_lea.sflag [#allocation5], %s1739_s29 }
 0x227   : > { %s1079_s5 = sshll.u32 %s941_s23, 7  ;;  %p1320_p11 = scmp.ne.s32.totalorder %s1934_s15, %s1319_s25 }
 0x229   : > { %858 = vrot.lane.b32.xlu0 %v849_v58, %s1478_s8  ;;  %p1321_p4 = pnand %p1320_p11, %p2032_p0 }
 0x22b   : > { %p1322_p2 = pneg %p1321_p4 }
 0x22d   : > { %879 = vrot.lane.b32.xlu0 %v550_v29, %s1473_s7  ;;  %s1932_s7 = scalar_lea.hbm %s2031_s11, %s1079_s5 }
 0x25c   : > { %v618_v62 = vpop.permute.xlu1 %617 }
 0x266   : > { %v624_v4 = vpop.permute.xlu0 %623 }
 0x267   : > { %v622_v2 = vpop.permute.xlu1 %621  ;;  %v635_v61 = vadd.f32 %v624_v4, %v583_v37 }
 0x268   : > { %v627_v27 = vsel %vm625_vm15, %v622_v2, %v624_v4 }
 0x269   : > { %v634_v40 = vadd.f32 %v627_v27, %v582_v36 }
 0x26a   : > { %v672_v6 = vpop.permute.xlu0 %671 }
 0x26b   : > { %v666_v3 = vpop.permute.xlu1 %665  ;;  %v683_v45 = vadd.f32 %v672_v6, %v635_v61 }
 0x26f   : > { %v670_v5 = vpop.permute.xlu1 %669 }
 0x270   : > { %v675_v55 = vsel %vm673_vm0, %v670_v5, %v672_v6 }
 0x271   : > { %v682_v46 = vadd.f32 %v675_v55, %v634_v40 }
 0x273   : > { %v714_v7 = vpop.permute.xlu1 %713  ;;  %v720_v9 = vpop.permute.xlu0 %719 }
 0x274   : > { %v731_v51 = vadd.f32 %v720_v9, %v683_v45 }
 0x277   : > { %v718_v10 = vpop.permute.xlu1 %717 }
 0x278   : > { %v723_v43 = vsel %vm721_vm1, %v718_v10, %v720_v9 }
 0x279   : > { %v730_v8 = vadd.f32 %v723_v43, %v682_v46 }
 0x27b   : > { %v768_v11 = vpop.permute.xlu0 %767  ;;  %v762_v13 = vpop.permute.xlu1 %761 }
 0x27c   : > { %v779_v56 = vadd.f32 %v768_v11, %v731_v51 }
 0x27f   : > { %v816_v14 = vpop.permute.xlu0 %815  ;;  %v766_v15 = vpop.permute.xlu1 %765 }
 0x280   : > { %v771_v48 = vsel %vm769_vm2, %v766_v15, %v768_v11 }
 0x281   : > { %v778_v28 = vadd.f32 %v771_v48, %v730_v8 }
 0x283   : > { %v863_v16 = vpop.permute.xlu0 %862  ;;  %v810_v17 = vpop.permute.xlu1 %809 }
 0x287   : > { %v620_v18 = vpop.permute.xlu0 %619  ;;  %v814_v19 = vpop.permute.xlu1 %813 }
 0x288   : > { %v626_v26 = vsel %vm625_vm15, %v618_v62, %v620_v18  ;;  %v633_v30 = vadd.f32 %v620_v18, %v581_v25  ;;  %v818_v53 = vsel %vm519_vm7, %v814_v19, %v816_v14  ;;  %v826_v62 = vadd.f32 %v816_v14, %v779_v56 }
 0x289   : > { %v632_v63 = vadd.f32 %v626_v26, %v580_v1  ;;  %v825_v2 = vadd.f32 %v818_v53, %v778_v28 }
 0x28a   : > { %v874_v5 = vadd.f32 %v863_v16, %v826_v62 }
 0x28b   : > { %v668_v20 = vpop.permute.xlu0 %667  ;;  %v857_v35 = vpop.permute.xlu1 %856 }
 0x28c   : > { %v674_v38 = vsel %vm673_vm0, %v666_v3, %v668_v20  ;;  %v681_v41 = vadd.f32 %v668_v20, %v633_v30 }
 0x28d   : > { %v680_v44 = vadd.f32 %v674_v38, %v632_v63 }
 0x28f   : > { %v716_v24 = vpop.permute.xlu0 %715  ;;  %v861_v49 = vpop.permute.xlu1 %860 }
 0x290   : > { %v722_v42 = vsel %vm721_vm1, %v714_v7, %v716_v24  ;;  %v729_v47 = vadd.f32 %v716_v24, %v681_v41  ;;  %v866_v58 = vsel %vm864_vm3, %v861_v49, %v863_v16 }
 0x291   : > { %v728_v32 = vadd.f32 %v722_v42, %v680_v44  ;;  %v873_v6 = vadd.f32 %v866_v58, %v825_v2 }
 0x293   : > { %v764_v39 = vpop.permute.xlu0 %763  ;;  %v878_v60 = vpop.permute.xlu1 %877 }
 0x294   : > { %v770_v33 = vsel %vm769_vm2, %v762_v13, %v764_v39  ;;  %v777_v12 = vadd.f32 %v764_v39, %v729_v47 }
 0x295   : > { %v776_v54 = vadd.f32 %v770_v33, %v728_v32 }
 0x297   : > { %v812_v50 = vpop.permute.xlu0 %811 }
 0x298   : > { %v817_v52 = vsel %vm519_vm7, %v810_v17, %v812_v50  ;;  %v824_v57 = vadd.f32 %v812_v50, %v777_v12 }
 0x299   : > { %v823_v29 = vadd.f32 %v817_v52, %v776_v54 }
 0x29b   : > { %v859_v59 = vpop.permute.xlu0 %858 }
 0x29c   : > { %v865_v31 = vsel %vm864_vm3, %v857_v35, %v859_v59  ;;  %v872_v3 = vadd.f32 %v859_v59, %v824_v57 }
 0x29d   : > { %v871_v4 = vadd.f32 %v865_v31, %v823_v29 }
 0x29e   : > { %v884_v7 = vmul.f32 %v878_v60, %v872_v3 }
 0x29f   : > { %v883_v9 = vmul.f32 %v878_v60, %v871_v4  ;;  %v880_v10 = vpop.permute.xlu0 %879 }
 0x2a0   : > { %v885_v11 = vmul.f32 %v880_v10, %v873_v6  ;;  %v886_v13 = vmul.f32 %v880_v10, %v874_v5  ;;  %v898_v17 = vsel %vm897_vm5, %v884_v7, 0.0 }
 0x2a1   : > { %v888_v15 = vsel %vm887_vm4, %v883_v9, 0.0 }
 0x2a2   : > { %v889_v18 = vsel %vm887_vm4, %v885_v11, 0.0  ;;  %v899_v19 = vsel %vm897_vm5, %v886_v13, 0.0 }
 0x2a3   : > { %v890_v20 = vadd.f32 %v889_v18, %v888_v15  ;;  %v900_v14 = vadd.f32 %v899_v19, %v898_v17 }
 0x2a5   : > { %v891_v0 = vrot.slane %v890_v20, 4  ;;  %v901_v21 = vrot.slane %v900_v14, 4 }
 0x2a7   : > { %v892_v22 = vadd.f32 %v891_v0, %v890_v20  ;;  %v902_v23 = vadd.f32 %v901_v21, %v900_v14 }
 0x2a9   : > { %v893_v24 = vrot.slane %v892_v22, 2  ;;  %v903_v16 = vrot.slane %v902_v23, 2 }
 0x2ab   : > { %v894_v25 = vadd.f32 %v893_v24, %v892_v22  ;;  %v904_v26 = vadd.f32 %v903_v16, %v902_v23 }
 0x2ad   : > { %v895_v27 = vrot.slane %v894_v25, 1  ;;  %v905_v1 = vrot.slane %v904_v26, 1 }
 0x2af   : > { %v896_v35 = vadd.f32 %v895_v27, %v894_v25  ;;  %v906_v36 = vadd.f32 %v905_v1, %v904_v26 }
 0x2b1   : > { %v1075_v37 = vmul.f32 -1.442695, %v896_v35  ;;  %v1076_v30 = vmul.f32 -1.442695, %v906_v36 }
 0x2b3   : > { %1251 = vpow2.f32 %v1075_v37 }
 0x2b4   : > { %1253 = vpow2.f32 %v1076_v30 }
 0x2bd   : > { %v1252_v38 = vpop.eup %1251 }
 0x2be   : > { %v1254_v55 = vpop.eup %1253  ;;  %v913_v63 = vadd.f32 1.0, %v1252_v38 }
 0x2bf   : > { %v914_v39 = vadd.f32 1.0, %v1254_v55 }
 0x2c0   : > { %1255 = vrcp.f32 %v913_v63 }
 0x2c1   : > { %1257 = vrcp.f32 %v914_v39 }
 0x2ca   : > { %v1256_v61 = vpop.eup %1255 }
 0x2cb   : > { %v1258_v40 = vpop.eup %1257  ;;  %921 = vrot.lane.b32.xlu1 %v1256_v61, %s1474_s16 }
 0x2cc   : > { %923 = vrot.lane.b32.xlu0 %v1258_v40, %s1474_s16  ;;  %s1479_s16 = smov [#allocation8]  }
 0x2cd   : > { %s1323_s14 = sshll.u32 %s1479_s16, 4  ;;  %s1324_s14 = int_to_ptr.vmem [resolvable:$false] %s1323_s14 }
 0x2ce   : > { %s1325_s13 = scalar_lea.vmem %s1324_s14, 256  ;;  %p1326_p3 = scmp.lt.s32.totalorder %s1934_s15, %s1324_s14 }
 0x2cf   : > { %p1327_p5 = scmp.lt.s32.totalorder %s1325_s13, %s1319_s25 }
 0x2d1   : > { %p1328_p7 = por %p1327_p5, %p1326_p3 }
 0x2d3   : > { %p1329_p8 = pnand %p1328_p7, %p1322_p2 }
 0x33d   : > { %v922_v41 = vpop.permute.xlu1 %921 }
 0x33e   : > { %v924_v42 = vpop.permute.xlu0 %923 }
 0x33f   : > { %v925_v43 = vsel %vm625_vm15, %v922_v41, %v924_v42 }
 0x340   : > { %v927_v44 = vmul.f32 %v925_v43, %v1785_v34 }
 0x342   : > { %928 = vst [vmem:[%s297_s12] sm:$0xff] %v927_v44 }
 0x343   : > { %1332 = shalt.err (!%p1329_p8)
}
 0x344   : > { %s1333_s29 = scalar_lea.hbm %s1932_s7, 128  ;;  %s1337_s9 = scalar_lea.hbm %s2031_s11, 512 }
 0x345   : > { %p1334_p6 = scmp.ne.s32.totalorder %s1932_s7, %s1333_s29  ;;  %p1338_p12 = scmp.lt.u32.totalorder %s1932_s7, %s2031_s11 }
 0x346   : > { %p1339_p13 = scmp.lt.u32.totalorder %s1337_s9, %s1333_s29  ;;  %p1341_p11 = scmp.lt.u32.totalorder %s1333_s29, %s1932_s7 }
 0x347   : > { %p1335_p9 = pnand %p1334_p6, %p2032_p0 }
 0x348   : > { %p1340_p1 = por %p1339_p13, %p1338_p12 }
 0x349   : > { %p1336_p10 = pneg %p1335_p9 }
 0x34a   : > { %p1342_p4 = por %p1341_p11, %p1340_p1 }
 0x34c   : > { %p1343_p2 = pnand %p1342_p4, %p1336_p10 }
 0x34e   : > { %1346 = shalt.err (!%p1343_p2)
}
 0x34f   : > { %1100 = dma.vmem_to_hbm [thread:$0]  (%p2032_p0), %s1934_s15, 128, %s1932_s7, %s930_s24  }
 0x350 PF: > { %s2033_s5 = sld [smem:[#allocation17_spill]]  ;;  %p1114_p3 = scmp.ge.s32.totalorder %s1445_s28, 2 }
 0x351   : > { %s957_s12 = sand.u32 1, %s1417_s21  }
 0x352   : > { %s958_s30 = scalar_lea.sflag [#allocation5], %s957_s12 }
 0x356   : > { %p2034_p5 = scmp.ne.s32.totalorder %s2033_s5, 0 }
 0x358   : > { %p1110_p7 = pnand %p1114_p3, %p2034_p5 }
 0x35a   : > { %1400 = dma.done.wait (!%p1110_p7), %s958_s30, 128  }
 0x35b   : > { %1402 = vsyncadd (!%p1110_p7), %s958_s30, 4294967168  ;;  %s24_s28 = sadd.s32 1, %s1445_s28   ;;  %s2035_s10 = sld [smem:[#allocation15_spill]] }
 0x35c   : > { %p21_p8 = scmp.ge.s32.totalorder %s24_s28, 6   ;;  %s2036_s25 = sld [smem:[#allocation12_spill]] }
 0x35d   : > { %s2037_s23 = sld [smem:[#allocation16_spill]]  ;;  %s2038_s15 = sld [smem:[#allocation13_spill]] }
 0x35e   : > { %s2039_s7 = sld [smem:[#allocation14_spill]]  ;;  %s2040_s18 = smov %s1409_s19 }
 0x35f   : > { %s2041_s19 = smov %s1413_s20  ;;  %s2043_s21 = smov %s1421_s22 }
 0x360   : > { %s2045_s24 = smov %s1437_s26  ;;  %23 = sbr.rel (!%p21_p8) target bundleno = 13 (0xd), region = 98 }
 0x361   : > { %s2042_s20 = smov %s2035_s10 }
 0x362   : > { %s2044_s22 = smov %s2036_s25  ;;  %s2046_s25 = smov %s1441_s27 }
 0x363   : > { %s2047_s26 = smov %s2038_s15 }
 0x364   : > { %s2048_s27 = smov %s2039_s7 }
 0x367   :  { %963 = vsyncpa [#allocation4], 1 }
 0x368   :  { %965 = vsyncpa [#allocation4 + $0x1], 1 }
 0x369   :  { %966 = vsyncpa [#allocation7], 1 }
 0x36a   :  { %968 = vsyncpa [#allocation7 + $0x1], 1 }
 0x36b   :  { %969 = vsyncpa [#allocation5], 1 }
 0x36c   :  { %971 = vsyncpa [#allocation5 + $0x1], 1 }

</bundles_post_ra>
